<compile_context>
chip_gen: v5e
topology: v5e:2x2
jax: 0.10.0
libtpu: 0.0.40
codegen_flags: <defaults>
</compile_context>

<pallas_src>
import functools
import math

import jax
import jax.numpy as jnp
from jax import lax
from jax.experimental import pallas as pl
from jax.experimental.pallas import tpu as pltpu


def _round_up(x, m):
    return (x + m - 1) // m * m


def _pick_vmem_limit_bytes():
    """Generation-aware VMEM budget: ~100 MiB on v5e/v6e, ~52 MiB on v7x."""
    cap = 64 * 1024 * 1024
    try:
        cap = int(pltpu.get_tpu_info().vmem_capacity_bytes)
    except Exception:
        pass
    if cap >= 100 * 1024 * 1024:       # v5e / v6e: 128 MiB physical VMEM
        return 100 * 1024 * 1024
    return 52 * 1024 * 1024            # v7x: 64 MiB physical VMEM per TC


def _weight_spec(block_shape, index_map, single_buffer):
    """BlockSpec for grid-invariant operands (weights / bias)."""
    if single_buffer:
        # Constant index map -> the block is never re-fetched; one buffer is
        # enough and halves the weights' VMEM footprint (matters on v7x).
        return pl.BlockSpec(block_shape, index_map,
                            pipeline_mode=pl.Buffered(1))
    return pl.BlockSpec(block_shape, index_map)


# ---------------------------------------------------------------------------
# Stage 1: fused QKV projection  x @ Wqkv^T  (softmax scale folded into Q cols)
# ---------------------------------------------------------------------------
def qkv_proj_kernel(x_ref, w_ref, o_ref):
    o_ref[...] = jnp.dot(
        x_ref[...], w_ref[...], preferred_element_type=jnp.float32
    ).astype(o_ref.dtype)


# ---------------------------------------------------------------------------
# Stage 2: flash attention + fused output projection
# ---------------------------------------------------------------------------
def flash_attention_kernel(
    q_ref, k_ref, v_ref, wproj_ref, bproj_ref,      # inputs
    o_ref,                                          # output
    m_scr, l_scr, acc_scr,                          # scratch
    *, kv_tile, n_valid, need_mask):
    ki = pl.program_id(2)

    # ---- init online-softmax state per (b, q_tile) --------------------------
    @pl.when(ki == 0)
    def _init():
        m_scr[...] = jnp.full_like(m_scr, -jnp.inf)
        l_scr[...] = jnp.zeros_like(l_scr)
        acc_scr[...] = jnp.zeros_like(acc_scr)

    q = q_ref[...]                      # (H, TQ, hd) bf16, pre-scaled
    k = k_ref[...]                      # (H, TK, hd) bf16
    v = v_ref[...]                      # (H, TK, hd) bf16

    # ---- scores: head-batched matmul, contraction over head_dim -------------
    s = jnp.einsum("hqd,hkd->hqk", q, k, preferred_element_type=jnp.float32)

    if need_mask:
        col = ki * kv_tile + lax.broadcasted_iota(jnp.int32, s.shape, 2)
        s = jnp.where(col < n_valid, s, -1e30)
        # Every kv tile holds >= 1 valid column, so exp(-1e30 - m_new)
        # underflows to exactly 0 — no second mask pass on p is needed.

    # ---- online softmax (f32) ------------------------------------------------
    m_prev = m_scr[...]
    m_new = jnp.maximum(m_prev, jnp.max(s, axis=-1, keepdims=True))
    alpha = jnp.exp(m_prev - m_new)
    p = jnp.exp(s - m_new)
    l_scr[...] = alpha * l_scr[...] + jnp.sum(p, axis=-1, keepdims=True)
    acc_scr[...] = alpha * acc_scr[...] + jnp.einsum(
        "hqk,hkd->hqd", p.astype(jnp.bfloat16), v,
        preferred_element_type=jnp.float32)
    m_scr[...] = m_new

    # ---- finalize: normalize, fold head-merge into the output projection ----
    @pl.when(ki == pl.num_programs(2) - 1)
    def _finalize():
        inv_l = pl.reciprocal(l_scr[...], approx=True)           # (H, TQ, 1)
        out_h = (acc_scr[...] * inv_l).astype(jnp.bfloat16)      # (H, TQ, hd)
        num_heads = out_h.shape[0]
        # Accumulate H small (TQ, hd) @ (hd, C) matmuls into one lane-dense
        # (TQ, C) f32 buffer: the head sum rides MXU accumulation instead of
        # materializing an (H, TQ, C) f32 temporary.
        out2d = jnp.dot(out_h[0], wproj_ref[0],
                        preferred_element_type=jnp.float32)
        for h in range(1, num_heads):
            out2d += jnp.dot(out_h[h], wproj_ref[h],
                             preferred_element_type=jnp.float32)
        o_ref[...] = (out2d + bproj_ref[...]).astype(o_ref.dtype)


def _attention_fwd(x, wqkv, wproj, bproj, num_heads, qk_scale, max_tile,
                   single_buffer_weights):
    B, N, C = x.shape
    H = num_heads
    hd = C // H
    scale = qk_scale if qk_scale is not None else hd ** (-0.5)
    out_dtype = x.dtype

    # Tile: multiple of 8 sublanes, capped at 256 (fills the 256-wide MXU on
    # v6e/v7x and keeps the working set under v7x's 64 MiB VMEM; sweep 512 on
    # v5e/v6e if desired).
    T = min(max_tile, _round_up(N, 8))
    n_pad = _round_up(N, T)
    need_mask = n_pad != N

    x_p = jnp.pad(x, ((0, 0), (0, n_pad - N), (0, 0))) if need_mask else x
    x_bf = x_p.astype(jnp.bfloat16)

    # Wqkv is (3C, C) torch (out, in) layout -> (C, 3C); fold the softmax
    # scale into the Q output columns so Q comes out of stage 1 pre-scaled.
    w_qkv_t = wqkv.T.astype(jnp.float32)
    w_qkv_t = w_qkv_t.at[:, :C].multiply(scale)
    w_qkv_bf = w_qkv_t.astype(jnp.bfloat16)                      # (C, 3C)

    wproj_r = wproj.T.reshape(H, hd, C).astype(jnp.bfloat16)     # (H, hd, C)
    bproj_r = bproj.reshape(1, C).astype(jnp.float32)

    vmem_limit = _pick_vmem_limit_bytes()

    # -------- Stage 1: QKV projection (K/V computed once per sequence) -------
    qkv = pl.pallas_call(
        qkv_proj_kernel,
        out_shape=jax.ShapeDtypeStruct((B, n_pad, 3 * C), jnp.bfloat16),
        grid=(B, n_pad // T),
        in_specs=[
            pl.BlockSpec((None, T, C), lambda b, i: (b, i, 0)),
            _weight_spec((C, 3 * C), lambda b, i: (0, 0),
                         single_buffer_weights),
        ],
        out_specs=pl.BlockSpec((None, T, 3 * C), lambda b, i: (b, i, 0)),
        compiler_params=pltpu.CompilerParams(
            dimension_semantics=("parallel", "parallel"),
            vmem_limit_bytes=vmem_limit),
    )(x_bf, w_qkv_bf)

    # Head split (pure layout change, done once in XLA, matches torch's
    # permute(2, 0, 3, 1, 4)): q, k, v each (B, H, n_pad, hd) bf16.
    qkv_h = qkv.reshape(B, n_pad, 3, H, hd).transpose(2, 0, 3, 1, 4)
    q, k, v = qkv_h[0], qkv_h[1], qkv_h[2]

    # -------- Stage 2: flash attention + fused output projection -------------
    kernel = functools.partial(
        flash_attention_kernel, kv_tile=T, n_valid=N, need_mask=need_mask)

    out = pl.pallas_call(
        kernel,
        out_shape=jax.ShapeDtypeStruct((B, n_pad, C), out_dtype),
        grid=(B, n_pad // T, n_pad // T),
        in_specs=[
            pl.BlockSpec((None, H, T, hd), lambda b, qi, ki: (b, 0, qi, 0)),
            pl.BlockSpec((None, H, T, hd), lambda b, qi, ki: (b, 0, ki, 0)),
            pl.BlockSpec((None, H, T, hd), lambda b, qi, ki: (b, 0, ki, 0)),
            _weight_spec((H, hd, C), lambda b, qi, ki: (0, 0, 0),
                         single_buffer_weights),
            _weight_spec((1, C), lambda b, qi, ki: (0, 0),
                         single_buffer_weights),
        ],
        out_specs=pl.BlockSpec((None, T, C), lambda b, qi, ki: (b, qi, 0)),
        scratch_shapes=[
            pltpu.VMEM((H, T, 1), jnp.float32),    # running max m
            pltpu.VMEM((H, T, 1), jnp.float32),    # running sum l
            pltpu.VMEM((H, T, hd), jnp.float32),   # output accumulator
        ],
        compiler_params=pltpu.CompilerParams(
            dimension_semantics=("parallel", "parallel", "arbitrary"),
            vmem_limit_bytes=vmem_limit),
    )(q, k, v, wproj_r, bproj_r)

    return out[:, :N, :] if need_mask else out


def pallas_attention(x, wqkv, wproj, bproj, num_heads, qk_scale=None,
                     max_tile=256):
    """Forward of timesformer Attention (with_qkv=True, dropout p=0).

    x: (B, N, C) f32.  wqkv: (3C, C), wproj: (C, C) in torch (out, in) layout,
    bproj: (C,)."""
    # TODO(synk): dropout with p > 0 (training mode) is not implemented.
    # TODO(synk): with_qkv=False path (no projections) is not implemented.
    # TODO(synk): for tiny N (TimeSformer temporal attention, N~8) multiple
    #             batch elements could be folded into one query tile to fill
    #             sublanes and amortize per-grid-step overhead.
    try:
        return _attention_fwd(x, wqkv, wproj, bproj, num_heads, qk_scale,
                              max_tile, single_buffer_weights=True)
    except Exception:
        # pl.Buffered(1) single-buffering not supported by this JAX build;
        # fall back to default double buffering for the invariant weights.
        return _attention_fwd(x, wqkv, wproj, bproj, num_heads, qk_scale,
                              max_tile, single_buffer_weights=False)


def reference_attention(x, wqkv, wproj, bproj, num_heads, qk_scale=None):
    """Pure-JAX f32 re-implementation of the PyTorch forward, for verification."""
    B, N, C = x.shape
    H = num_heads
    hd = C // H
    scale = qk_scale if qk_scale is not None else hd ** (-0.5)
    qkv = x @ wqkv.T                                            # (B, N, 3C)
    qkv = qkv.reshape(B, N, 3, H, hd).transpose(2, 0, 3, 1, 4)
    q, k, v = qkv[0], qkv[1], qkv[2]                            # (B, H, N, hd)
    attn = jnp.einsum("bhqd,bhkd->bhqk", q, k) * scale
    attn = jax.nn.softmax(attn, axis=-1)
    out = jnp.einsum("bhqk,bhkd->bhqd", attn, v)
    out = out.transpose(0, 2, 1, 3).reshape(B, N, C)
    return out @ wproj.T + bproj.reshape(1, 1, C)


if __name__ == "__main__":
    # Small shapes consistent with the module: dim=C=32, num_heads=8, head_dim=4
    B, N, C, H = 2, 8, 32, 8

    key = jax.random.PRNGKey(0)
    k_x, k_qkv, k_proj, k_bias = jax.random.split(key, 4)

    x = jax.random.normal(k_x, (B, N, C), dtype=jnp.float32)

    # kaiming_uniform(fan_in, relu)-style init: bound = sqrt(6 / fan_in)
    bound_w = math.sqrt(6.0 / C)
    wqkv = jax.random.uniform(k_qkv, (3 * C, C), minval=-bound_w,
                              maxval=bound_w, dtype=jnp.float32)   # (out, in)
    wproj = jax.random.uniform(k_proj, (C, C), minval=-bound_w,
                               maxval=bound_w, dtype=jnp.float32)
    bound_b = 1.0 / math.sqrt(C)
    bproj = jax.random.uniform(k_bias, (C,), minval=-bound_b,
                               maxval=bound_b, dtype=jnp.float32)

    out = pallas_attention(x, wqkv, wproj, bproj, H)
    out = jax.block_until_ready(out)

    ref = reference_attention(x, wqkv, wproj, bproj, H)
    assert out.shape == (B, N, C)
    # Tolerance reflects bf16 matmul operands (MXU-native) vs the f32 reference.
    max_err = jnp.max(jnp.abs(out - ref))
    assert jnp.allclose(out, ref, atol=5e-2, rtol=5e-2), f"max abs err {max_err}"

    print("KERNEL_OK")
</pallas_src>

<mosaic_0001>
module attributes {stable_mosaic.version = 11 : i64} {
  func.func @qkv_proj_kernel(%arg0: i32, %arg1: i32, %arg2: memref<1x8x32xbf16, #tpu.memory_space<vmem>>, %arg3: memref<32x96xbf16, #tpu.memory_space<vmem>>, %arg4: memref<1x8x96xbf16, #tpu.memory_space<vmem>>) attributes {dimension_semantics = [#tpu.dimension_semantics<parallel>, #tpu.dimension_semantics<parallel>], iteration_bounds = array<i64: 2, 1>, scalar_prefetch = 0 : i64, scratch_operands = 0 : i64, tpu.core_type = #tpu.core_type<tc>, window_params = [{transform_indices = @transform_0, window_bounds = array<i64: 1, 8, 32>}, {pipeline_mode = #tpu.pipeline_mode<synchronous>, transform_indices = @transform_1, window_bounds = array<i64: 32, 96>}, {transform_indices = @transform_2, window_bounds = array<i64: 1, 8, 96>}]} {
    %c0 = arith.constant 0 : index
    %c0_0 = arith.constant 0 : index
    %c0_1 = arith.constant 0 : index
    %0 = vector.load %arg2[%c0, %c0_0, %c0_1] : memref<1x8x32xbf16, #tpu.memory_space<vmem>>, vector<1x8x32xbf16>
    %1 = vector.shape_cast %0 : vector<1x8x32xbf16> to vector<8x32xbf16>
    %c0_2 = arith.constant 0 : index
    %c0_3 = arith.constant 0 : index
    %2 = vector.load %arg3[%c0_2, %c0_3] : memref<32x96xbf16, #tpu.memory_space<vmem>>, vector<32x96xbf16>
    %cst = arith.constant dense<0.000000e+00> : vector<8x96xf32>
    %3 = tpu.matmul %1, %2, %cst {dimension_numbers = #tpu.dot_dimension_numbers<[1], [0], [0], [1], [0, 0, 1, 1], [], []>} : vector<8x32xbf16>, vector<32x96xbf16>, vector<8x96xf32> -> vector<8x96xf32>
    %4 = arith.truncf %3 : vector<8x96xf32> to vector<8x96xbf16>
    %c0_4 = arith.constant 0 : index
    %c0_5 = arith.constant 0 : index
    %c0_6 = arith.constant 0 : index
    %5 = vector.load %arg4[%c0_4, %c0_5, %c0_6] : memref<1x8x96xbf16, #tpu.memory_space<vmem>>, vector<1x8x96xbf16>
    %6 = vector.shape_cast %5 : vector<1x8x96xbf16> to vector<8x96xbf16>
    %7 = vector.shape_cast %4 : vector<8x96xbf16> to vector<1x8x96xbf16>
    tpu.vector_store %arg4[%c0_4, %c0_5, %c0_6], %7 {strides = array<i32>} : memref<1x8x96xbf16, #tpu.memory_space<vmem>>, vector<1x8x96xbf16>,
    return
  }
  func.func @transform_0(%arg0: i32, %arg1: i32) -> (i32, i32, i32) {
    %c0_i32 = arith.constant 0 : i32
    %c0_i32_0 = arith.constant 0 : i32
    return %arg0, %arg1, %c0_i32 : i32, i32, i32
  }
  func.func @transform_1(%arg0: i32, %arg1: i32) -> (i32, i32) {
    %c0_i32 = arith.constant 0 : i32
    %c0_i32_0 = arith.constant 0 : i32
    %c0_i32_1 = arith.constant 0 : i32
    return %c0_i32, %c0_i32_0 : i32, i32
  }
  func.func @transform_2(%arg0: i32, %arg1: i32) -> (i32, i32, i32) {
    %c0_i32 = arith.constant 0 : i32
    %c0_i32_0 = arith.constant 0 : i32
    return %arg0, %arg1, %c0_i32 : i32, i32, i32
  }
}

module attributes {stable_mosaic.version = 11 : i64} {
  func.func @qkv_proj_kernel(%arg0: i32, %arg1: i32, %arg2: memref<1x8x32xbf16, #tpu.memory_space<vmem>>, %arg3: memref<32x96xbf16, #tpu.memory_space<vmem>>, %arg4: memref<1x8x96xbf16, #tpu.memory_space<vmem>>) attributes {dimension_semantics = [#tpu.dimension_semantics<parallel>, #tpu.dimension_semantics<parallel>], iteration_bounds = array<i64: 2, 1>, scalar_prefetch = 0 : i64, scratch_operands = 0 : i64, tpu.core_type = #tpu.core_type<tc>, window_params = [{transform_indices = @transform_0, window_bounds = array<i64: 1, 8, 32>}, {pipeline_mode = #tpu.pipeline_mode<synchronous>, transform_indices = @transform_1, window_bounds = array<i64: 32, 96>}, {transform_indices = @transform_2, window_bounds = array<i64: 1, 8, 96>}]} {
    %c0 = arith.constant 0 : index
    %c0_0 = arith.constant 0 : index
    %c0_1 = arith.constant 0 : index
    %0 = vector.load %arg2[%c0, %c0_0, %c0_1] : memref<1x8x32xbf16, #tpu.memory_space<vmem>>, vector<1x8x32xbf16>
    %1 = vector.shape_cast %0 : vector<1x8x32xbf16> to vector<8x32xbf16>
    %c0_2 = arith.constant 0 : index
    %c0_3 = arith.constant 0 : index
    %2 = vector.load %arg3[%c0_2, %c0_3] : memref<32x96xbf16, #tpu.memory_space<vmem>>, vector<32x96xbf16>
    %cst = arith.constant dense<0.000000e+00> : vector<8x96xf32>
    %3 = tpu.matmul %1, %2, %cst {dimension_numbers = #tpu.dot_dimension_numbers<[1], [0], [0], [1], [0, 0, 1, 1], [], []>} : vector<8x32xbf16>, vector<32x96xbf16>, vector<8x96xf32> -> vector<8x96xf32>
    %4 = arith.truncf %3 : vector<8x96xf32> to vector<8x96xbf16>
    %c0_4 = arith.constant 0 : index
    %c0_5 = arith.constant 0 : index
    %c0_6 = arith.constant 0 : index
    %5 = vector.load %arg4[%c0_4, %c0_5, %c0_6] : memref<1x8x96xbf16, #tpu.memory_space<vmem>>, vector<1x8x96xbf16>
    %6 = vector.shape_cast %5 : vector<1x8x96xbf16> to vector<8x96xbf16>
    %7 = vector.shape_cast %4 : vector<8x96xbf16> to vector<1x8x96xbf16>
    tpu.vector_store %arg4[%c0_4, %c0_5, %c0_6], %7 {strides = array<i32>} : memref<1x8x96xbf16, #tpu.memory_space<vmem>>, vector<1x8x96xbf16>,
    return
  }
  func.func @transform_0(%arg0: i32, %arg1: i32) -> (i32, i32, i32) {
    %c0_i32 = arith.constant 0 : i32
    %c0_i32_0 = arith.constant 0 : i32
    return %arg0, %arg1, %c0_i32 : i32, i32, i32
  }
  func.func @transform_1(%arg0: i32, %arg1: i32) -> (i32, i32) {
    %c0_i32 = arith.constant 0 : i32
    %c0_i32_0 = arith.constant 0 : i32
    %c0_i32_1 = arith.constant 0 : i32
    return %c0_i32, %c0_i32_0 : i32, i32
  }
  func.func @transform_2(%arg0: i32, %arg1: i32) -> (i32, i32, i32) {
    %c0_i32 = arith.constant 0 : i32
    %c0_i32_0 = arith.constant 0 : i32
    return %arg0, %arg1, %c0_i32 : i32, i32, i32
  }
}

</mosaic_0001>

<bundles_post_ra>
// kernel: tpu_custom_call.1
= control target key start
LH: loop header
LB: loop body
LE: loop exit
PB: predicated region body
PF: predicated region fallthrough
CT: control target
= control target key end

     0   :  { %7 = vsyncpa [#allocation3], 0  ;;  %s750_s0 = inlined_call_operand.hbm [shape: bf16[2,8,32], index: 0, kind: input, shape index: {}]   ;;  %s751_s1 = inlined_call_operand.hbm [shape: bf16[32,96], index: 1, kind: input, shape index: {}]   ;;  %s752_s2 = inlined_call_operand.hbm [shape: bf16[2,8,96], index: 2, kind: output, shape index: {}]  }
   0x1   :  { %9 = vsyncpa [#allocation3 + $0x1], 0 }
   0x2   :  { %10 = vsyncpa [#allocation6], 0 }
   0x3   :  { %11 = vsyncpa [#allocation4], 0 }
   0x4   :  { %13 = vsyncpa [#allocation4 + $0x1], 0  ;;  %s607_s9 = smov 0   ;;  %s609_s10 = smov 0  }
   0x5   :  { %s611_s11 = smov 0   ;;  %s613_s12 = smov 0  }
   0x6   :  { %s615_s13 = smov 0   ;;  %s617_s14 = smov 0  }
   0x7 LB: > { %s340_s15 = sadd.s32 4294967295, %s587_s14   ;;  %p342_p0 = scmp.ge.s32.totalorder %s587_s14, 1  ;;  %s587_s14 = sphi %s617_s14, %s19_s14   ;;  %s583_s13 = sphi %s615_s13, %s763_s13   ;;  %s579_s12 = sphi %s613_s12, %s762_s12   ;;  %s575_s11 = sphi %s611_s11, %s761_s11   ;;  %s571_s10 = sphi %s609_s10, %s760_s10   ;;  %s567_s9 = sphi %s607_s9, %s759_s9  }
   0x8   : > { %p639_p1 = scmp.eq.s32.totalorder %s340_s15, 0  ;;  %p113_p2 = scmp.lt.s32.totalorder %s587_s14, 3 }
   0x9   : > { %s124_s19 = sshll.u32 %s751_s1, 4  ;;  %s589_s21 = smov [#allocation5]   ;;  %s125_s19 = int_to_ptr.hbm [resolvable:$true] %s124_s19 }
   0xa   : > { %p647_p3 = pnand %p342_p0, %p113_p2  ;;  %s126_s22 = sshll.u32 %s589_s21, 4  ;;  %s127_s22 = int_to_ptr.vmem [resolvable:$true] %s126_s22 }
   0xb   : > { %p344_p6 = scmp.ge.s32.totalorder %s587_s14, 2  ;;  %s590_s23 = smov 64  }
   0xc   : > { %p374_p4 = pneg %p647_p3  ;;  %s591_s24 = smov 4  }
   0xd   : > { %s341_s25 = sadd.s32 4294967294, %s587_s14   ;;  %s31_s26 = sadd.s32 1, %s583_s13 }
   0xe   : > { %p375_p5 = pnand %p374_p4, %p639_p1  ;;  %s40_s27 = sadd.s32 1, %s575_s11 }
   0xf   : > { %p33_p7 = scmp.ge.s32.totalorder %s31_s26, 2  ;;  %p47_p8 = scmp.ne.s32.totalorder %s575_s11, %s571_s10 }
  0x10   : > { %377 = dma.hbm_to_vmem [thread:$0]  (!%p375_p5), %s125_s19, 256, %s127_s22, [#allocation6], %s590_s23, %s590_s23, %s591_s24  }
  0x11   : > { %p48_p9 = scmp.eq.s32.totalorder %s587_s14, 0  ;;  %p53_p10 = scmp.ne.s32.totalorder %s571_s10, %s567_s9 }
  0x12   : > { %s765_s26 = smov (%p33_p7, %s31_s26), 0  ;;  %p100_p13 = scmp.eq.s32.totalorder %s340_s15, 1 }
  0x13   : > { %p666_p11 = por %p48_p9, %p47_p8  ;;  %p672_p12 = por %p639_p1, %p53_p10 }
  0x14   : > { %s35_s30 = ssub.s32 %s583_s13, %s765_s26  ;;  %p106_p2 = scmp.eq.s32.totalorder %s341_s25, 1 }
  0x15   : > { %p38_p0 = scmp.eq.s32.totalorder %s35_s30, 0  ;;  %p678_p4 = por %p100_p13, %p47_p8 }
  0x16   : > { %p387_p5 = scmp.lt.s32.totalorder %s587_s14, 2  ;;  %p686_p7 = por %p106_p2, %p53_p10 }
  0x17   : > { %s684_s4 = scalar_select %p38_p0, %s575_s11, %s40_s27  }
  0x18   : > { %s140_s6 = sand.u32 1, %s575_s11   ;;  %s346_s8 = sshll.u32 %s583_s13, 2 }
  0x19   : > { %s345_s7 = sshll.u32 %s140_s6, 2  ;;  %s149_s15 = scalar_lea.hbm %s750_s0, %s346_s8 }
  0x1a   : > { %s144_s19 = scalar_lea.vmem [#allocation2], %s345_s7  ;;  %s151_s22 = sshll.u32 %s149_s15, 4  ;;  %s152_s22 = int_to_ptr.hbm [resolvable:$true] %s151_s22 }
  0x1b   : > { %s153_s21 = sshll.u32 %s144_s19, 4  ;;  %p379_p8 = pnand %p387_p5, %p666_p11  ;;  %s154_s21 = int_to_ptr.vmem [resolvable:$true] %s153_s21 }
  0x1c   : > { %s141_s23 = scalar_lea.sflag [#allocation3], %s140_s6  ;;  %162 = sbr.rel (%p647_p3) target bundleno = 178 (0xb2), region = 28 }
  0x1d   : > { %381 = dma.hbm_to_vmem [thread:$0]  (!%p379_p8), %s152_s22, 64, %s154_s21, %s141_s23  }
  0x1e   : > { %s700_s24 = sand.u32 (!%p647_p3), 1, %s571_s10  }
  0x1f   : > { %s348_s25 = sshll.u32 (!%p647_p3), %s700_s24, 2  ;;  %s165_s27 = scalar_lea.sflag (!%p647_p3), [#allocation3], %s700_s24 }
  0x20   : > { %s168_s30 = scalar_lea.vmem (!%p647_p3), [#allocation2], %s348_s25 }
  0x21   : > { %554 = dma.done.wait (%p672_p12), %s165_s27, 64  }
  0x22   : > { %556 = vsyncadd (%p672_p12), %s165_s27, 4294967232 }
  0x23   : > { %558 = dma.done.wait (%p639_p1), [#allocation6], 256  }
  0x24   : > { %560 = vsyncadd (%p639_p1), [#allocation6], 4294967040  ;;  %v365_v0 = vld [vmem:[#allocation5 + $0x8] sm:$0xff]  ;;  %v364_v1 = vld [vmem:[#allocation5] sm:$0xff]  ;;  %vm213_vm0 = vcmask 261120   ;;  %s361_s20 = sshll.u32 %s579_s12, 2 }
  0x25   : > { %223 = vmatpush.bf16.msra.mxu0 %v365_v0  ;;  %v196_v2 = vld [vmem:[%s168_s30] sm:$0xf]  ;;  %s245_s29 = scalar_lea.hbm %s752_s2, %s361_s20  ;;  %s194_s7 = scalar_lea.vmem [#allocation7], %s348_s25  ;;  %vm231_vm1 = vcmask 781312  }
  0x26   : > { %s247_s8 = sshll.u32 %s194_s7, 4  ;;  %s249_s17 = sshll.u32 %s245_s29, 4  ;;  %s248_s8 = int_to_ptr.vmem [resolvable:$true] %s247_s8  ;;  %s250_s17 = int_to_ptr.hbm [resolvable:$true] %s249_s17 }
  0x27   : > { %s234_s16 = scalar_lea.sflag [#allocation4], %s700_s24  ;;  %s515_s18 = sshra.s32 %s250_s17, 4  ;;  %s516_s18 = int_to_ptr.hbm [resolvable:$true] %s515_s18 }
  0x28   : > { %s517_s15 = scalar_lea.hbm %s516_s18, 4  ;;  %s521_s21 = scalar_lea.hbm %s752_s2, 8 }
  0x29   : > { %224 = vmatpush.bf16.msra.mxu0 %v364_v1  ;;  %p518_p1 = scmp.ne.s32.totalorder %s516_s18, %s517_s15  ;;  %p522_p10 = scmp.lt.s32.totalorder %s516_s18, %s752_s2 }
  0x2a   : > { %p523_p11 = scmp.lt.s32.totalorder %s521_s21, %s517_s15 }
  0x2b   : > { %p519_p3 = pnand %p518_p1, %p678_p4 }
  0x2c   : > { %359 = vmatmul.msk.bf16.vlgmr.msra.gmra.mxu0 %vm213_vm0, %v196_v2  ;;  %p524_p12 = por %p523_p11, %p522_p10 }
  0x2d   : > { %p520_p9 = pneg %p519_p3 }
  0x2f   : > { %p525_p13 = pnand %p524_p12, %p520_p9 }
  0xa9   : > { %v226_v3 = vpop.f32.mrf.mxu0 }
  0xaa   : > { %v230_v4 = vpack.c.bf16 %v226_v3, %v226_v3 }
  0xac   : > { %232 = vst.msk [vmem:[%s194_s7] sm:$0xf] %vm231_vm1, %v230_v4 }
  0xad   : > { %528 = shalt.err (!%p525_p13)
}
  0xae   : > { %372 = dma.vmem_to_hbm [thread:$0]  (%p678_p4), %s248_s8, 64, %s250_s17, %s234_s16  }
  0xb1   : > { %v228_v5 = vpop.f32.mrf.mxu0 }
  0xb2 PF: > { %s261_s24 = sand.u32 1, %s567_s9   ;;  %p383_p0 = pnand %p344_p6, %p686_p7 }
  0xb3   : > { %s262_s25 = scalar_lea.sflag [#allocation4], %s261_s24 }
  0xb4   : > { %p384_p2 = pneg %p383_p0 }
  0xb6   : > { %562 = dma.done.wait (%p384_p2), %s262_s25, 64  }
  0xb7   : > { %564 = vsyncadd (%p384_p2), %s262_s25, 4294967232  ;;  %s19_s14 = sadd.s32 1, %s587_s14   ;;  %s759_s9 = smov %s571_s10 }
  0xb8   : > { %p16_p5 = scmp.ge.s32.totalorder %s19_s14, 4   ;;  %s760_s10 = smov %s575_s11 }
  0xb9   : > { %s761_s11 = smov %s684_s4  ;;  %s762_s12 = smov %s583_s13 }
  0xba   : > { %s763_s13 = smov %s765_s26  ;;  %18 = sbr.rel (!%p16_p5) target bundleno = 7 (0x7), region = 77 }
  0xbf   :  { %268 = vsyncpa [#allocation3], 1 }
  0xc0   :  { %270 = vsyncpa [#allocation3 + $0x1], 1 }
  0xc1   :  { %271 = vsyncpa [#allocation6], 1 }
  0xc2   :  { %272 = vsyncpa [#allocation4], 1 }
  0xc3   :  { %274 = vsyncpa [#allocation4 + $0x1], 1 }

// kernel: tpu_custom_call.1
= control target key start
LH: loop header
LB: loop body
LE: loop exit
PB: predicated region body
PF: predicated region fallthrough
CT: control target
= control target key end

     0   :  { %7 = vsyncpa [#allocation3], 0  ;;  %s750_s0 = inlined_call_operand.hbm [shape: bf16[2,8,32], index: 0, kind: input, shape index: {}]   ;;  %s751_s1 = inlined_call_operand.hbm [shape: bf16[32,96], index: 1, kind: input, shape index: {}]   ;;  %s752_s2 = inlined_call_operand.hbm [shape: bf16[2,8,96], index: 2, kind: output, shape index: {}]  }
   0x1   :  { %9 = vsyncpa [#allocation3 + $0x1], 0 }
   0x2   :  { %10 = vsyncpa [#allocation6], 0 }
   0x3   :  { %11 = vsyncpa [#allocation4], 0 }
   0x4   :  { %13 = vsyncpa [#allocation4 + $0x1], 0  ;;  %s607_s9 = smov 0   ;;  %s609_s10 = smov 0  }
   0x5   :  { %s611_s11 = smov 0   ;;  %s613_s12 = smov 0  }
   0x6   :  { %s615_s13 = smov 0   ;;  %s617_s14 = smov 0  }
   0x7 LB: > { %s340_s15 = sadd.s32 4294967295, %s587_s14   ;;  %p342_p0 = scmp.ge.s32.totalorder %s587_s14, 1  ;;  %s587_s14 = sphi %s617_s14, %s19_s14   ;;  %s583_s13 = sphi %s615_s13, %s763_s13   ;;  %s579_s12 = sphi %s613_s12, %s762_s12   ;;  %s575_s11 = sphi %s611_s11, %s761_s11   ;;  %s571_s10 = sphi %s609_s10, %s760_s10   ;;  %s567_s9 = sphi %s607_s9, %s759_s9  }
   0x8   : > { %p639_p1 = scmp.eq.s32.totalorder %s340_s15, 0  ;;  %p113_p2 = scmp.lt.s32.totalorder %s587_s14, 3 }
   0x9   : > { %s124_s19 = sshll.u32 %s751_s1, 4  ;;  %s589_s21 = smov [#allocation5]   ;;  %s125_s19 = int_to_ptr.hbm [resolvable:$true] %s124_s19 }
   0xa   : > { %p647_p3 = pnand %p342_p0, %p113_p2  ;;  %s126_s22 = sshll.u32 %s589_s21, 4  ;;  %s127_s22 = int_to_ptr.vmem [resolvable:$true] %s126_s22 }
   0xb   : > { %p344_p6 = scmp.ge.s32.totalorder %s587_s14, 2  ;;  %s590_s23 = smov 64  }
   0xc   : > { %p374_p4 = pneg %p647_p3  ;;  %s591_s24 = smov 4  }
   0xd   : > { %s341_s25 = sadd.s32 4294967294, %s587_s14   ;;  %s31_s26 = sadd.s32 1, %s583_s13 }
   0xe   : > { %p375_p5 = pnand %p374_p4, %p639_p1  ;;  %s40_s27 = sadd.s32 1, %s575_s11 }
   0xf   : > { %p33_p7 = scmp.ge.s32.totalorder %s31_s26, 2  ;;  %p47_p8 = scmp.ne.s32.totalorder %s575_s11, %s571_s10 }
  0x10   : > { %377 = dma.hbm_to_vmem [thread:$0]  (!%p375_p5), %s125_s19, 256, %s127_s22, [#allocation6], %s590_s23, %s590_s23, %s591_s24  }
  0x11   : > { %p48_p9 = scmp.eq.s32.totalorder %s587_s14, 0  ;;  %p53_p10 = scmp.ne.s32.totalorder %s571_s10, %s567_s9 }
  0x12   : > { %s765_s26 = smov (%p33_p7, %s31_s26), 0  ;;  %p100_p13 = scmp.eq.s32.totalorder %s340_s15, 1 }
  0x13   : > { %p666_p11 = por %p48_p9, %p47_p8  ;;  %p672_p12 = por %p639_p1, %p53_p10 }
  0x14   : > { %s35_s30 = ssub.s32 %s583_s13, %s765_s26  ;;  %p106_p2 = scmp.eq.s32.totalorder %s341_s25, 1 }
  0x15   : > { %p38_p0 = scmp.eq.s32.totalorder %s35_s30, 0  ;;  %p678_p4 = por %p100_p13, %p47_p8 }
  0x16   : > { %p387_p5 = scmp.lt.s32.totalorder %s587_s14, 2  ;;  %p686_p7 = por %p106_p2, %p53_p10 }
  0x17   : > { %s684_s4 = scalar_select %p38_p0, %s575_s11, %s40_s27  }
  0x18   : > { %s140_s6 = sand.u32 1, %s575_s11   ;;  %s346_s8 = sshll.u32 %s583_s13, 2 }
  0x19   : > { %s345_s7 = sshll.u32 %s140_s6, 2  ;;  %s149_s15 = scalar_lea.hbm %s750_s0, %s346_s8 }
  0x1a   : > { %s144_s19 = scalar_lea.vmem [#allocation2], %s345_s7  ;;  %s151_s22 = sshll.u32 %s149_s15, 4  ;;  %s152_s22 = int_to_ptr.hbm [resolvable:$true] %s151_s22 }
  0x1b   : > { %s153_s21 = sshll.u32 %s144_s19, 4  ;;  %p379_p8 = pnand %p387_p5, %p666_p11  ;;  %s154_s21 = int_to_ptr.vmem [resolvable:$true] %s153_s21 }
  0x1c   : > { %s141_s23 = scalar_lea.sflag [#allocation3], %s140_s6  ;;  %162 = sbr.rel (%p647_p3) target bundleno = 178 (0xb2), region = 28 }
  0x1d   : > { %381 = dma.hbm_to_vmem [thread:$0]  (!%p379_p8), %s152_s22, 64, %s154_s21, %s141_s23  }
  0x1e   : > { %s700_s24 = sand.u32 (!%p647_p3), 1, %s571_s10  }
  0x1f   : > { %s348_s25 = sshll.u32 (!%p647_p3), %s700_s24, 2  ;;  %s165_s27 = scalar_lea.sflag (!%p647_p3), [#allocation3], %s700_s24 }
  0x20   : > { %s168_s30 = scalar_lea.vmem (!%p647_p3), [#allocation2], %s348_s25 }
  0x21   : > { %554 = dma.done.wait (%p672_p12), %s165_s27, 64  }
  0x22   : > { %556 = vsyncadd (%p672_p12), %s165_s27, 4294967232 }
  0x23   : > { %558 = dma.done.wait (%p639_p1), [#allocation6], 256  }
  0x24   : > { %560 = vsyncadd (%p639_p1), [#allocation6], 4294967040  ;;  %v365_v0 = vld [vmem:[#allocation5 + $0x8] sm:$0xff]  ;;  %v364_v1 = vld [vmem:[#allocation5] sm:$0xff]  ;;  %vm213_vm0 = vcmask 261120   ;;  %s361_s20 = sshll.u32 %s579_s12, 2 }
  0x25   : > { %223 = vmatpush.bf16.msra.mxu0 %v365_v0  ;;  %v196_v2 = vld [vmem:[%s168_s30] sm:$0xf]  ;;  %s245_s29 = scalar_lea.hbm %s752_s2, %s361_s20  ;;  %s194_s7 = scalar_lea.vmem [#allocation7], %s348_s25  ;;  %vm231_vm1 = vcmask 781312  }
  0x26   : > { %s247_s8 = sshll.u32 %s194_s7, 4  ;;  %s249_s17 = sshll.u32 %s245_s29, 4  ;;  %s248_s8 = int_to_ptr.vmem [resolvable:$true] %s247_s8  ;;  %s250_s17 = int_to_ptr.hbm [resolvable:$true] %s249_s17 }
  0x27   : > { %s234_s16 = scalar_lea.sflag [#allocation4], %s700_s24  ;;  %s515_s18 = sshra.s32 %s250_s17, 4  ;;  %s516_s18 = int_to_ptr.hbm [resolvable:$true] %s515_s18 }
  0x28   : > { %s517_s15 = scalar_lea.hbm %s516_s18, 4  ;;  %s521_s21 = scalar_lea.hbm %s752_s2, 8 }
  0x29   : > { %224 = vmatpush.bf16.msra.mxu0 %v364_v1  ;;  %p518_p1 = scmp.ne.s32.totalorder %s516_s18, %s517_s15  ;;  %p522_p10 = scmp.lt.s32.totalorder %s516_s18, %s752_s2 }
  0x2a   : > { %p523_p11 = scmp.lt.s32.totalorder %s521_s21, %s517_s15 }
  0x2b   : > { %p519_p3 = pnand %p518_p1, %p678_p4 }
  0x2c   : > { %359 = vmatmul.msk.bf16.vlgmr.msra.gmra.mxu0 %vm213_vm0, %v196_v2  ;;  %p524_p12 = por %p523_p11, %p522_p10 }
  0x2d   : > { %p520_p9 = pneg %p519_p3 }
  0x2f   : > { %p525_p13 = pnand %p524_p12, %p520_p9 }
  0xa9   : > { %v226_v3 = vpop.f32.mrf.mxu0 }
  0xaa   : > { %v230_v4 = vpack.c.bf16 %v226_v3, %v226_v3 }
  0xac   : > { %232 = vst.msk [vmem:[%s194_s7] sm:$0xf] %vm231_vm1, %v230_v4 }
  0xad   : > { %528 = shalt.err (!%p525_p13)
}
  0xae   : > { %372 = dma.vmem_to_hbm [thread:$0]  (%p678_p4), %s248_s8, 64, %s250_s17, %s234_s16  }
  0xb1   : > { %v228_v5 = vpop.f32.mrf.mxu0 }
  0xb2 PF: > { %s261_s24 = sand.u32 1, %s567_s9   ;;  %p383_p0 = pnand %p344_p6, %p686_p7 }
  0xb3   : > { %s262_s25 = scalar_lea.sflag [#allocation4], %s261_s24 }
  0xb4   : > { %p384_p2 = pneg %p383_p0 }
  0xb6   : > { %562 = dma.done.wait (%p384_p2), %s262_s25, 64  }
  0xb7   : > { %564 = vsyncadd (%p384_p2), %s262_s25, 4294967232  ;;  %s19_s14 = sadd.s32 1, %s587_s14   ;;  %s759_s9 = smov %s571_s10 }
  0xb8   : > { %p16_p5 = scmp.ge.s32.totalorder %s19_s14, 4   ;;  %s760_s10 = smov %s575_s11 }
  0xb9   : > { %s761_s11 = smov %s684_s4  ;;  %s762_s12 = smov %s583_s13 }
  0xba   : > { %s763_s13 = smov %s765_s26  ;;  %18 = sbr.rel (!%p16_p5) target bundleno = 7 (0x7), region = 77 }
  0xbf   :  { %268 = vsyncpa [#allocation3], 1 }
  0xc0   :  { %270 = vsyncpa [#allocation3 + $0x1], 1 }
  0xc1   :  { %271 = vsyncpa [#allocation6], 1 }
  0xc2   :  { %272 = vsyncpa [#allocation4], 1 }
  0xc3   :  { %274 = vsyncpa [#allocation4 + $0x1], 1 }

</bundles_post_ra>
